<compile_context>
chip_gen: v7x
topology: tpu7x:2x2x1
jax: 0.10.0
libtpu: 0.0.40
codegen_flags: <defaults>
</compile_context>

<pallas_src>
import math
import functools

import jax
import jax.numpy as jnp
from jax import lax
from jax.experimental import pallas as pl
from jax.experimental.pallas import tpu as pltpu


def _round_up(a, b):
    return (a + b - 1) // b * b


def _bert_intermediate_kernel(x_ref, w_ref, b_ref, o_ref):
    # x_ref: (tm, H)  activations
    # w_ref: (tn, H)  torch-layout weight tile (out_features, in_features)
    # b_ref: (1, tn)  bias tile
    # o_ref: (tm, tn) output tile
    acc = lax.dot_general(
        x_ref[...], w_ref[...],
        dimension_numbers=(((1,), (1,)), ((), ())),   # contract H with H
        preferred_element_type=jnp.float32)
    acc = acc + b_ref[...].astype(jnp.float32)
    # exact GELU: x * 0.5 * (1 + erf(x / sqrt(2))), in f32 (erf on EUP)
    y = acc * 0.5 * (1.0 + lax.erf(acc * (1.0 / math.sqrt(2.0))))
    o_ref[...] = y.astype(o_ref.dtype)


def _pick_tiles(M, I, H, itemsize, tm, tn):
    """Choose big MXU-friendly tiles that fit a conservative VMEM budget."""
    if tm is None:
        tm = min(512, _round_up(M, 16))
    if tn is None:
        tn = min(1024, _round_up(I, 128))
    tm = max(16, _round_up(tm, 16))
    tn = max(128, _round_up(tn, 128))

    # double-buffered activations + weights + bias + output, plus f32 temp
    def vmem_bytes(m, n):
        return (2 * (m * H + n * H + n + m * n) * itemsize + m * n * 4)

    budget = 40 << 20  # leave headroom below the physical/scoped limit
    while vmem_bytes(tm, tn) > budget and (tm > 128 or tn > 256):
        if tn >= 2 * tm and tn > 256:
            tn //= 2
        elif tm > 128:
            tm //= 2
        else:
            tn //= 2
    tm = max(16, _round_up(tm, 16))
    tn = max(128, _round_up(tn, 128))
    return tm, tn, vmem_bytes(tm, tn)


@functools.partial(jax.jit, static_argnames=("tm", "tn"))
def bert_intermediate(hidden_states, weight, bias, *, tm=None, tn=None):
    """hidden_states: (B, S, H); weight: (I, H) torch layout; bias: (I,)."""
    B, S, H = hidden_states.shape
    I = weight.shape[0]
    M = B * S
    dtype = hidden_states.dtype
    itemsize = jnp.dtype(dtype).itemsize

    tm, tn, vmem_est = _pick_tiles(M, I, H, itemsize, tm, tn)

    M_pad = _round_up(M, tm)
    N_pad = _round_up(I, tn)

    # --- prepare operands (pad instead of asserting divisibility) ---
    x2d = hidden_states.reshape(M, H)
    if M_pad != M:
        x2d = jnp.pad(x2d, ((0, M_pad - M), (0, 0)))
    w = weight                       # keep torch layout (I, H); no transpose
    b = bias
    if N_pad != I:
        w = jnp.pad(w, ((0, N_pad - I), (0, 0)))
        b = jnp.pad(b, (0, N_pad - I))
    b2d = b.reshape(1, N_pad)

    n_m = M_pad // tm
    n_n = N_pad // tn

    vmem_limit = int(min(64 << 20, max(16 << 20, int(1.25 * vmem_est))))
    cost = pl.CostEstimate(
        flops=2 * M * H * I,
        transcendentals=M * I,
        bytes_accessed=(M * H + I * H + I + M * I) * itemsize,
    )

    out2d = pl.pallas_call(
        _bert_intermediate_kernel,
        out_shape=jax.ShapeDtypeStruct((M_pad, N_pad), dtype),
        grid_spec=pltpu.PrefetchScalarGridSpec(
            num_scalar_prefetch=0,
            # N-axis outermost, M-axis innermost: weight tile block index is
            # constant over the inner M loop -> fetched once per column
            # stripe; activations stream through once per stripe.
            grid=(n_n, n_m),
            in_specs=[
                pl.BlockSpec((tm, H), lambda j, i: (i, 0)),   # activations
                pl.BlockSpec((tn, H), lambda j, i: (j, 0)),   # weight (I, H)
                pl.BlockSpec((1, tn), lambda j, i: (0, j)),   # bias
            ],
            out_specs=pl.BlockSpec((tm, tn), lambda j, i: (i, j)),
        ),
        compiler_params=pltpu.CompilerParams(
            dimension_semantics=("parallel", "parallel"),
            vmem_limit_bytes=vmem_limit),
        cost_estimate=cost,
    )(x2d, w, b2d)

    out2d = out2d[:M, :I]
    return out2d.reshape(B, S, I)


def _reference(hidden_states, weight, bias):
    x = hidden_states.astype(jnp.float32)
    y = x @ weight.astype(jnp.float32).T + bias.astype(jnp.float32)
    return y * 0.5 * (1.0 + lax.erf(y / jnp.sqrt(2.0)))


if __name__ == "__main__":
    # small BERT-ish config
    batch, seq, hidden_size, intermediate_size = 2, 8, 32, 128

    key = jax.random.PRNGKey(0)
    k_x, k_w, k_b = jax.random.split(key, 3)

    hidden_states = jax.random.normal(k_x, (batch, seq, hidden_size), jnp.float32)
    # torch nn.Linear stores weight as (out_features, in_features)
    weight = jax.random.normal(k_w, (intermediate_size, hidden_size), jnp.float32) * 0.02
    bias = jax.random.normal(k_b, (intermediate_size,), jnp.float32) * 0.02

    out = bert_intermediate(hidden_states, weight, bias)
    out = jax.block_until_ready(out)

    ref = _reference(hidden_states, weight, bias)
    assert out.shape == (batch, seq, intermediate_size)
    assert jnp.allclose(out, ref, atol=1e-5, rtol=1e-5)

    print("KERNEL_OK")
</pallas_src>

<mosaic_0001>
module attributes {stable_mosaic.version = 11 : i64} {
  func.func @_bert_intermediate_kernel(%arg0: i32, %arg1: i32, %arg2: memref<16x32xf32, #tpu.memory_space<vmem>>, %arg3: memref<128x32xf32, #tpu.memory_space<vmem>>, %arg4: memref<1x128xf32, #tpu.memory_space<vmem>>, %arg5: memref<16x128xf32, #tpu.memory_space<vmem>>) attributes {dimension_semantics = [#tpu.dimension_semantics<parallel>, #tpu.dimension_semantics<parallel>], iteration_bounds = array<i64: 1, 1>, scalar_prefetch = 0 : i64, scratch_operands = 0 : i64, tpu.core_type = #tpu.core_type<tc>, window_params = [{transform_indices = @transform_0, window_bounds = array<i64: 16, 32>}, {transform_indices = @transform_1, window_bounds = array<i64: 128, 32>}, {transform_indices = @transform_2, window_bounds = array<i64: 1, 128>}, {transform_indices = @transform_3, window_bounds = array<i64: 16, 128>}]} {
    %c0 = arith.constant 0 : index
    %c0_0 = arith.constant 0 : index
    %0 = vector.load %arg2[%c0, %c0_0] : memref<16x32xf32, #tpu.memory_space<vmem>>, vector<16x32xf32>
    %c0_1 = arith.constant 0 : index
    %c0_2 = arith.constant 0 : index
    %1 = vector.load %arg3[%c0_1, %c0_2] : memref<128x32xf32, #tpu.memory_space<vmem>>, vector<128x32xf32>
    %cst = arith.constant dense<0.000000e+00> : vector<16x128xf32>
    %2 = tpu.matmul %0, %1, %cst {dimension_numbers = #tpu.dot_dimension_numbers<[1], [1], [0], [0], [0, 0, 1, 0], [], []>} : vector<16x32xf32>, vector<128x32xf32>, vector<16x128xf32> -> vector<16x128xf32>
    %c0_3 = arith.constant 0 : index
    %c0_4 = arith.constant 0 : index
    %3 = vector.load %arg4[%c0_3, %c0_4] : memref<1x128xf32, #tpu.memory_space<vmem>>, vector<1x128xf32>
    %4 = vector.broadcast %3 : vector<1x128xf32> to vector<16x128xf32>
    %5 = arith.addf %2, %4 : vector<16x128xf32>
    %cst_5 = arith.constant 5.000000e-01 : f32
    %6 = vector.broadcast %cst_5 : f32 to vector<16x128xf32>
    %7 = arith.mulf %5, %6 : vector<16x128xf32>
    %cst_6 = arith.constant 0.707106769 : f32
    %8 = vector.broadcast %cst_6 : f32 to vector<16x128xf32>
    %9 = arith.mulf %5, %8 : vector<16x128xf32>
    %10 = math.erf %9 : vector<16x128xf32>
    %cst_7 = arith.constant 1.000000e+00 : f32
    %11 = vector.broadcast %cst_7 : f32 to vector<16x128xf32>
    %12 = arith.addf %11, %10 : vector<16x128xf32>
    %13 = arith.mulf %7, %12 : vector<16x128xf32>
    %c0_8 = arith.constant 0 : index
    %c0_9 = arith.constant 0 : index
    %14 = vector.load %arg5[%c0_8, %c0_9] : memref<16x128xf32, #tpu.memory_space<vmem>>, vector<16x128xf32>
    tpu.vector_store %arg5[%c0_8, %c0_9], %13 {strides = array<i32>} : memref<16x128xf32, #tpu.memory_space<vmem>>, vector<16x128xf32>,
    return
  }
  func.func @transform_0(%arg0: i32, %arg1: i32) -> (i32, i32) {
    %c0_i32 = arith.constant 0 : i32
    %c0_i32_0 = arith.constant 0 : i32
    return %arg1, %c0_i32 : i32, i32
  }
  func.func @transform_1(%arg0: i32, %arg1: i32) -> (i32, i32) {
    %c0_i32 = arith.constant 0 : i32
    %c0_i32_0 = arith.constant 0 : i32
    return %arg0, %c0_i32 : i32, i32
  }
  func.func @transform_2(%arg0: i32, %arg1: i32) -> (i32, i32) {
    %c0_i32 = arith.constant 0 : i32
    %c0_i32_0 = arith.constant 0 : i32
    return %c0_i32, %arg0 : i32, i32
  }
  func.func @transform_3(%arg0: i32, %arg1: i32) -> (i32, i32) {
    %c0_i32 = arith.constant 0 : i32
    return %arg1, %arg0 : i32, i32
  }
}

</mosaic_0001>

<bundles_post_ra>
// kernel: bert_intermediate.1
= control target key start
LH: loop header
LB: loop body
LE: loop exit
PB: predicated region body
PF: predicated region fallthrough
CT: control target
= control target key end

     0   :  { %vm40_vm0 = vcmask 261120   ;;  %s481_s0 = inlined_call_operand.vmem [shape: f32[16,32], index: 0, kind: input, shape index: {}]   ;;  %s482_s1 = inlined_call_operand.vmem [shape: f32[128,32], index: 1, kind: input, shape index: {}]   ;;  %s483_s2 = inlined_call_operand.vmem [shape: f32[1,128], index: 2, kind: input, shape index: {}]   ;;  %s484_s3 = inlined_call_operand.hbm [shape: f32[16,128], index: 3, kind: output, shape index: {}]  }
   0x1   :  { %v17_v0 = vld [vmem:[%s482_s1] sm:$0xff]  ;;  %v18_v1 = vld [vmem:[%s482_s1 + $0x8] sm:$0xff]  ;;  %v19_v2 = vld [vmem:[%s482_s1 + $0x10] sm:$0xff] }
   0x2   :  { %v270_v3 = vpack.c.bf16 %v18_v1, %v17_v0  ;;  %vm383_vm1 = vmpackc.low %vm40_vm0, %vm40_vm0  ;;  %v20_v5 = vld [vmem:[%s482_s1 + $0x18] sm:$0xff]  ;;  %v15_v7 = vld [vmem:[%s481_s0] sm:$0xff] }
   0x3   :  { %v276_v6 = vpack.c.bf16 %v20_v5, %v19_v2  ;;  %v21_v8 = vld [vmem:[%s482_s1 + $0x20] sm:$0xff]  ;;  %v22_v9 = vld [vmem:[%s482_s1 + $0x28] sm:$0xff]  ;;  %267 = vmatprep.mubr.msk.f32.mxu0 %vm40_vm0, %v15_v7 }
   0x4   :  { %272 = vmatprep.subr.msk.bf16.mxu0 %vm383_vm1, %v270_v3 }
   0x5   :  { %275 = vmatpush3.bf16.xpose.msk.msra.mxu0 %vm383_vm1, %v270_v3 }
   0x6   :  { %278 = vmatprep.subr.msk.bf16.mxu0 %vm383_vm1, %v276_v6 }
   0x7   :  { %8 = vsyncpa [#allocation3], 0  ;;  %v282_v10 = vpack.c.bf16 %v22_v9, %v21_v8  ;;  %v23_v11 = vld [vmem:[%s482_s1 + $0x30] sm:$0xff]  ;;  %v24_v12 = vld [vmem:[%s482_s1 + $0x38] sm:$0xff] }
   0x8   :  { %v288_v13 = vpack.c.bf16 %v24_v12, %v23_v11  ;;  %v25_v14 = vld [vmem:[%s482_s1 + $0x40] sm:$0xff]  ;;  %v26_v15 = vld [vmem:[%s482_s1 + $0x48] sm:$0xff]  ;;  %v27_v17 = vld [vmem:[%s482_s1 + $0x50] sm:$0xff] }
   0x9   :  { %v294_v16 = vpack.c.bf16 %v26_v15, %v25_v14  ;;  %v28_v18 = vld [vmem:[%s482_s1 + $0x58] sm:$0xff]  ;;  %v29_v20 = vld [vmem:[%s482_s1 + $0x60] sm:$0xff]  ;;  %v30_v21 = vld [vmem:[%s482_s1 + $0x68] sm:$0xff] }
   0xa   :  { %v300_v19 = vpack.c.bf16 %v28_v18, %v27_v17  ;;  %v306_v22 = vpack.c.bf16 %v30_v21, %v29_v20  ;;  %v31_v23 = vld [vmem:[%s482_s1 + $0x70] sm:$0xff]  ;;  %v32_v24 = vld [vmem:[%s482_s1 + $0x78] sm:$0xff]  ;;  %v16_v26 = vld [vmem:[%s481_s0 + $0x8] sm:$0xff]  ;;  %s349_s1 = smov [#allocation2]  }
   0xb   :  { %v312_v25 = vpack.c.bf16 %v32_v24, %v31_v23  ;;  %v198_v27 = vld [vmem:[%s483_s2] ss:$0 sm:$0xff]  ;;  %s187_s23 = sshll.u32 %s349_s1, 4  ;;  %s188_s23 = int_to_ptr.vmem [resolvable:$true] %s187_s23 }
   0xc   :  { %s325_s0 = scalar_lea.vmem %s188_s23, 256  ;;  %p330_p1 = scmp.lt.s32.totalorder %s188_s23, %s188_s23 }
   0xd   :  { %281 = vmatpush3.bf16.xpose.msk.msra.mxu0 %vm383_vm1, %v276_v6  ;;  %p326_p0 = scmp.ne.s32.totalorder %s188_s23, %s325_s0  ;;  %p331_p2 = scmp.lt.s32.totalorder %s325_s0, %s325_s0 }
   0xe   :  { %284 = vmatprep.subr.msk.bf16.mxu0 %vm383_vm1, %v282_v10 }
   0xf   :  { %p332_p3 = por %p331_p2, %p330_p1 }
  0x11   :  { %p333_p4 = pnand %p332_p3, %p326_p0 }
  0x15   :  { %287 = vmatpush3.bf16.xpose.msk.msra.mxu0 %vm383_vm1, %v282_v10 }
  0x16   :  { %290 = vmatprep.subr.msk.bf16.mxu0 %vm383_vm1, %v288_v13 }
  0x1d   :  { %293 = vmatpush3.bf16.xpose.msk.msra.mxu0 %vm383_vm1, %v288_v13 }
  0x1e   :  { %296 = vmatprep.subr.msk.bf16.mxu0 %vm383_vm1, %v294_v16 }
  0x25   :  { %299 = vmatpush3.bf16.xpose.msk.msra.mxu0 %vm383_vm1, %v294_v16 }
  0x26   :  { %302 = vmatprep.subr.msk.bf16.mxu0 %vm383_vm1, %v300_v19 }
  0x2d   :  { %305 = vmatpush3.bf16.xpose.msk.msra.mxu0 %vm383_vm1, %v300_v19 }
  0x2e   :  { %308 = vmatprep.subr.msk.bf16.mxu0 %vm383_vm1, %v306_v22 }
  0x35   :  { %311 = vmatpush3.bf16.xpose.msk.msra.mxu0 %vm383_vm1, %v306_v22 }
  0x36   :  { %314 = vmatprep.subr.msk.bf16.mxu0 %vm383_vm1, %v312_v25 }
  0x3d   :  { %317 = vmatpush3.bf16.xpose.msk.msra.mxu0 %vm383_vm1, %v312_v25 }
  0x44   :  { %268 = vmatmul.mubr.msk.f32.vlgmr.msra.gmra.mrb[0].mxu0 %vm40_vm0, %v16_v26 }
 0x117   :  { %v269_v28 = vpop.f32.mrb[0].mxu0 }
 0x118   :  { %v167_v29 = vadd.f32 %v269_v28, %v198_v27  ;;  %v161_v30 = vpop.f32.mrb[1].mxu0 }
 0x119   :  { %v162_v31 = vadd.f32 %v198_v27, %v161_v30 }
 0x11a   :  { %v173_v32 = vmul.f32 0.70710677, %v167_v29  ;;  %v171_v36 = vmul.f32 0.5, %v167_v29 }
 0x11b   :  { %v172_v33 = vmul.f32 0.70710677, %v162_v31  ;;  %v170_v38 = vmul.f32 0.5, %v162_v31 }
 0x11c   :  { %321 = verf.f32 %v173_v32 }
 0x11d   :  { %323 = verf.f32 %v172_v33 }
 0x126   :  { %v322_v34 = vpop.eup %321 }
 0x127   :  { %v324_v35 = vpop.eup %323  ;;  %v177_v37 = vadd.f32 1.0, %v322_v34 }
 0x128   :  { %v176_v39 = vadd.f32 1.0, %v324_v35 }
 0x129   :  { %v179_v40 = vmul.f32 %v177_v37, %v171_v36 }
 0x12a   :  { %v178_v41 = vmul.f32 %v176_v39, %v170_v38 }
 0x12b   :  { %181 = vst [vmem:[#allocation2 + $0x8] sm:$0xff] %v179_v40 }
 0x12c   :  { %180 = vst [vmem:[#allocation2] sm:$0xff] %v178_v41 }
 0x12d   :  { %336 = shalt.err (!%p333_p4)
}
 0x12e   :  { %s337_s25 = scalar_lea.hbm %s484_s3, 256 }
 0x12f   :  { %p338_p5 = scmp.ne.s32.totalorder %s484_s3, %s337_s25  ;;  %p341_p6 = scmp.lt.u32.totalorder %s337_s25, %s484_s3 }
 0x131   :  { %p343_p7 = pnand %p341_p6, %p338_p5 }
 0x133   :  { %346 = shalt.err (!%p343_p7)
}
 0x134   :  { %s350_s30 = smov 128   ;;  %s351_s4 = smov 8  }
 0x135   :  { %193 = dma.vmem_to_hbm [thread:$0]  %s188_s23, 256, %s484_s3, [#allocation3], %s350_s30, %s350_s30, %s351_s4  }
 0x136   :  { %347 = dma.done.wait [#allocation3], 256  }
 0x137   :  { %348 = vsyncadd [#allocation3], 4294967040 }
 0x138   :  { %197 = vsyncpa [#allocation3], 1 }

</bundles_post_ra>
